<compile_context>
chip_gen: v7x
topology: tpu7x:2x2x1
jax: 0.10.0
libtpu: 0.0.40
codegen_flags: <defaults>
</compile_context>

<pallas_src>
import jax
import jax.numpy as jnp
from jax.experimental import pallas as pl
from jax.experimental.pallas import tpu as pltpu


def _round_up(n, m):
    return (n + m - 1) // m * m


def _mlp_kernel(x_ref, w1_ref, b1_ref, w2_ref, b2_ref, w3_ref, b3_ref, o_ref):
    # Whole 3-layer MLP for one batch tile, fused in a single kernel.
    x = x_ref[...]  # bf16, no extra cast

    # Layer 1: Linear(input_size, 128) + ReLU   (f32 accumulate, f32 bias/ReLU)
    h1 = jnp.dot(x, w1_ref[...], preferred_element_type=jnp.float32) + b1_ref[...]
    h1 = jnp.maximum(h1, 0.0).astype(w2_ref.dtype)

    # Dropout(0.3): identity in eval mode (inference semantics).
    # TODO(synk): training-mode dropout (pltpu.prng_random_bits mask) not emitted.

    # Layer 2: Linear(128, 64->128 padded) + ReLU
    h2 = jnp.dot(h1, w2_ref[...], preferred_element_type=jnp.float32) + b2_ref[...]
    h2 = jnp.maximum(h2, 0.0).astype(w3_ref.dtype)

    # Layer 3: Linear(64->128 padded, num_classes->128 padded)
    out = jnp.dot(h2, w3_ref[...], preferred_element_type=jnp.float32) + b3_ref[...]
    o_ref[...] = out.astype(o_ref.dtype)


def classification_model_forward(x, params, *, batch_tile=256):
    """x: (B, input_size) float32.  params: dict of w1,b1,w2,b2,w3,b3 (f32)."""
    B, D_in = x.shape
    w1, b1 = params["w1"], params["b1"]       # (D_in, 128), (1, 128)
    w2, b2 = params["w2"], params["b2"]       # (128, 64),  (1, 64)
    w3, b3 = params["w3"], params["b3"]       # (64, C),    (1, C)
    H2 = w2.shape[1]
    C = w3.shape[1]

    # ---- lane-dense padding of the small N dims (64 -> 128, C -> 128) ----
    H2_pad = _round_up(max(H2, 128), 128)
    C_pad = _round_up(max(C, 128), 128)
    w2p = jnp.pad(w2, ((0, 0), (0, H2_pad - H2)))
    b2p = jnp.pad(b2, ((0, 0), (0, H2_pad - H2)))
    w3p = jnp.pad(w3, ((0, H2_pad - H2), (0, C_pad - C)))
    b3p = jnp.pad(b3, ((0, 0), (0, C_pad - C)))

    # ---- batch tiling / padding (wrapper-side, padded rows are sliced off) ----
    tile = int(min(batch_tile, _round_up(B, 8)))
    tile = _round_up(tile, 8)
    B_pad = _round_up(B, tile)
    xp = jnp.pad(x, ((0, B_pad - B), (0, 0)))

    # ---- bf16 MXU operands, f32 accumulation; biases stay f32 ----
    cd = jnp.bfloat16
    xp = xp.astype(cd)
    w1c, w2c, w3c = w1.astype(cd), w2p.astype(cd), w3p.astype(cd)
    b1c, b2c, b3c = (b1.astype(jnp.float32), b2p.astype(jnp.float32),
                     b3p.astype(jnp.float32))

    grid = (B_pad // tile,)

    # VMEM budget: resident (single-buffered) weights + double-buffered x/out tiles.
    resident = (w1c.size + w2c.size + w3c.size) * 2 \
             + (b1c.size + b2c.size + b3c.size) * 4
    streamed = 2 * (tile * D_in * 2) + 2 * (tile * C_pad * 4)
    vmem_limit = int(min(max(2 * (resident + streamed) + (4 << 20), 16 << 20),
                         48 << 20))

    vmem = pltpu.MemorySpace.VMEM
    out_pad = pl.pallas_call(
        _mlp_kernel,
        out_shape=jax.ShapeDtypeStruct((B_pad, C_pad), jnp.float32),
        grid_spec=pltpu.PrefetchScalarGridSpec(
            num_scalar_prefetch=0,
            grid=grid,
            in_specs=[
                pl.BlockSpec((tile, D_in), lambda i: (i, 0)),  # streamed x tile
                pl.BlockSpec(memory_space=vmem),               # W1 (resident, 1 buf)
                pl.BlockSpec(memory_space=vmem),               # b1
                pl.BlockSpec(memory_space=vmem),               # W2
                pl.BlockSpec(memory_space=vmem),               # b2
                pl.BlockSpec(memory_space=vmem),               # W3
                pl.BlockSpec(memory_space=vmem),               # b3
            ],
            out_specs=pl.BlockSpec((tile, C_pad), lambda i: (i, 0)),
        ),
        compiler_params=pltpu.CompilerParams(
            dimension_semantics=("parallel",),
            vmem_limit_bytes=vmem_limit,
        ),
    )(xp, w1c, b1c, w2c, b2c, w3c, b3c)

    # Slice off batch padding and class-lane padding.
    return out_pad[:B, :C]


def init_params(key, input_size, num_classes):
    """Deterministic init mimicking torch.nn.Linear default (U[-1/sqrt(fan_in), 1/sqrt(fan_in)])."""
    ks = jax.random.split(key, 6)

    def linear(kw, kb, fan_in, fan_out):
        bound = 1.0 / jnp.sqrt(float(fan_in))
        w = jax.random.uniform(kw, (fan_in, fan_out), jnp.float32, -bound, bound)
        b = jax.random.uniform(kb, (1, fan_out), jnp.float32, -bound, bound)
        return w, b

    w1, b1 = linear(ks[0], ks[1], input_size, 128)
    w2, b2 = linear(ks[2], ks[3], 128, 64)
    w3, b3 = linear(ks[4], ks[5], 64, num_classes)
    return {"w1": w1, "b1": b1, "w2": w2, "b2": b2, "w3": w3, "b3": b3}


def reference_forward(x, p):
    h1 = jnp.maximum(x @ p["w1"] + p["b1"], 0.0)
    h2 = jnp.maximum(h1 @ p["w2"] + p["b2"], 0.0)
    return h2 @ p["w3"] + p["b3"]


if __name__ == "__main__":
    key = jax.random.PRNGKey(0)
    kx, kp = jax.random.split(key)

    # Small, fast shapes; batch chosen so the default tile (256) gives a
    # 2-step parallel grid (exercises multi-tile path / v7x dual-TC sharding).
    batch, input_size, num_classes = 512, 32, 10
    x = jax.random.normal(kx, (batch, input_size), dtype=jnp.float32)
    params = init_params(kp, input_size, num_classes)

    out = classification_model_forward(x, params)
    out = jax.block_until_ready(out)

    ref = reference_forward(x, params)
    assert out.shape == (batch, num_classes)
    # bf16 operands (f32 accumulation) => looser tolerance than the f32 reference.
    assert jnp.allclose(out, ref, atol=2e-2, rtol=2e-2), "mismatch vs reference"

    print("KERNEL_OK")
</pallas_src>

<mosaic_0001>
module attributes {stable_mosaic.version = 11 : i64} {
  func.func @_mlp_kernel(%arg0: i32, %arg1: memref<256x32xbf16, #tpu.memory_space<vmem>>, %arg2: memref<32x128xbf16, #tpu.memory_space<vmem>>, %arg3: memref<1x128xf32, #tpu.memory_space<vmem>>, %arg4: memref<128x128xbf16, #tpu.memory_space<vmem>>, %arg5: memref<1x128xf32, #tpu.memory_space<vmem>>, %arg6: memref<128x128xbf16, #tpu.memory_space<vmem>>, %arg7: memref<1x128xf32, #tpu.memory_space<vmem>>, %arg8: memref<256x128xf32, #tpu.memory_space<vmem>>) attributes {dimension_semantics = [#tpu.dimension_semantics<parallel>], iteration_bounds = array<i64: 2>, scalar_prefetch = 0 : i64, scratch_operands = 0 : i64, tpu.core_type = #tpu.core_type<tc>, window_params = [{transform_indices = @transform_0, window_bounds = array<i64: 256, 32>}, {pipeline_mode = #tpu.pipeline_mode<synchronous>, transform_indices = @transform_1, window_bounds = array<i64: 32, 128>}, {pipeline_mode = #tpu.pipeline_mode<synchronous>, transform_indices = @transform_2, window_bounds = array<i64: 1, 128>}, {pipeline_mode = #tpu.pipeline_mode<synchronous>, transform_indices = @transform_3, window_bounds = array<i64: 128, 128>}, {pipeline_mode = #tpu.pipeline_mode<synchronous>, transform_indices = @transform_4, window_bounds = array<i64: 1, 128>}, {pipeline_mode = #tpu.pipeline_mode<synchronous>, transform_indices = @transform_5, window_bounds = array<i64: 128, 128>}, {pipeline_mode = #tpu.pipeline_mode<synchronous>, transform_indices = @transform_6, window_bounds = array<i64: 1, 128>}, {transform_indices = @transform_7, window_bounds = array<i64: 256, 128>}]} {
    %c0 = arith.constant 0 : index
    %c0_0 = arith.constant 0 : index
    %0 = vector.load %arg1[%c0, %c0_0] : memref<256x32xbf16, #tpu.memory_space<vmem>>, vector<256x32xbf16>
    %c0_1 = arith.constant 0 : index
    %c0_2 = arith.constant 0 : index
    %1 = vector.load %arg2[%c0_1, %c0_2] : memref<32x128xbf16, #tpu.memory_space<vmem>>, vector<32x128xbf16>
    %cst = arith.constant dense<0.000000e+00> : vector<256x128xf32>
    %2 = tpu.matmul %0, %1, %cst {dimension_numbers = #tpu.dot_dimension_numbers<[1], [0], [0], [1], [0, 0, 1, 1], [], []>} : vector<256x32xbf16>, vector<32x128xbf16>, vector<256x128xf32> -> vector<256x128xf32>
    %c0_3 = arith.constant 0 : index
    %c0_4 = arith.constant 0 : index
    %3 = vector.load %arg3[%c0_3, %c0_4] : memref<1x128xf32, #tpu.memory_space<vmem>>, vector<1x128xf32>
    %4 = vector.broadcast %3 : vector<1x128xf32> to vector<256x128xf32>
    %5 = arith.addf %2, %4 : vector<256x128xf32>
    %cst_5 = arith.constant 0.000000e+00 : f32
    %6 = vector.broadcast %cst_5 : f32 to vector<256x128xf32>
    %7 = arith.maximumf %5, %6 : vector<256x128xf32>
    %8 = arith.truncf %7 : vector<256x128xf32> to vector<256x128xbf16>
    %c0_6 = arith.constant 0 : index
    %c0_7 = arith.constant 0 : index
    %9 = vector.load %arg4[%c0_6, %c0_7] : memref<128x128xbf16, #tpu.memory_space<vmem>>, vector<128x128xbf16>
    %cst_8 = arith.constant dense<0.000000e+00> : vector<256x128xf32>
    %10 = tpu.matmul %8, %9, %cst_8 {dimension_numbers = #tpu.dot_dimension_numbers<[1], [0], [0], [1], [0, 0, 1, 1], [], []>} : vector<256x128xbf16>, vector<128x128xbf16>, vector<256x128xf32> -> vector<256x128xf32>
    %c0_9 = arith.constant 0 : index
    %c0_10 = arith.constant 0 : index
    %11 = vector.load %arg5[%c0_9, %c0_10] : memref<1x128xf32, #tpu.memory_space<vmem>>, vector<1x128xf32>
    %12 = vector.broadcast %11 : vector<1x128xf32> to vector<256x128xf32>
    %13 = arith.addf %10, %12 : vector<256x128xf32>
    %cst_11 = arith.constant 0.000000e+00 : f32
    %14 = vector.broadcast %cst_11 : f32 to vector<256x128xf32>
    %15 = arith.maximumf %13, %14 : vector<256x128xf32>
    %16 = arith.truncf %15 : vector<256x128xf32> to vector<256x128xbf16>
    %c0_12 = arith.constant 0 : index
    %c0_13 = arith.constant 0 : index
    %17 = vector.load %arg6[%c0_12, %c0_13] : memref<128x128xbf16, #tpu.memory_space<vmem>>, vector<128x128xbf16>
    %cst_14 = arith.constant dense<0.000000e+00> : vector<256x128xf32>
    %18 = tpu.matmul %16, %17, %cst_14 {dimension_numbers = #tpu.dot_dimension_numbers<[1], [0], [0], [1], [0, 0, 1, 1], [], []>} : vector<256x128xbf16>, vector<128x128xbf16>, vector<256x128xf32> -> vector<256x128xf32>
    %c0_15 = arith.constant 0 : index
    %c0_16 = arith.constant 0 : index
    %19 = vector.load %arg7[%c0_15, %c0_16] : memref<1x128xf32, #tpu.memory_space<vmem>>, vector<1x128xf32>
    %20 = vector.broadcast %19 : vector<1x128xf32> to vector<256x128xf32>
    %21 = arith.addf %18, %20 : vector<256x128xf32>
    %c0_17 = arith.constant 0 : index
    %c0_18 = arith.constant 0 : index
    %22 = vector.load %arg8[%c0_17, %c0_18] : memref<256x128xf32, #tpu.memory_space<vmem>>, vector<256x128xf32>
    tpu.vector_store %arg8[%c0_17, %c0_18], %21 {strides = array<i32>} : memref<256x128xf32, #tpu.memory_space<vmem>>, vector<256x128xf32>,
    return
  }
  func.func @transform_0(%arg0: i32) -> (i32, i32) {
    %c0_i32 = arith.constant 0 : i32
    %c0_i32_0 = arith.constant 0 : i32
    return %arg0, %c0_i32 : i32, i32
  }
  func.func @transform_1(%arg0: i32) -> (i32, i32) {
    %c0_i32 = arith.constant 0 : i32
    %c0_i32_0 = arith.constant 0 : i32
    %c0_i32_1 = arith.constant 0 : i32
    return %c0_i32, %c0_i32_0 : i32, i32
  }
  func.func @transform_2(%arg0: i32) -> (i32, i32) {
    %c0_i32 = arith.constant 0 : i32
    %c0_i32_0 = arith.constant 0 : i32
    %c0_i32_1 = arith.constant 0 : i32
    return %c0_i32, %c0_i32_0 : i32, i32
  }
  func.func @transform_3(%arg0: i32) -> (i32, i32) {
    %c0_i32 = arith.constant 0 : i32
    %c0_i32_0 = arith.constant 0 : i32
    %c0_i32_1 = arith.constant 0 : i32
    return %c0_i32, %c0_i32_0 : i32, i32
  }
  func.func @transform_4(%arg0: i32) -> (i32, i32) {
    %c0_i32 = arith.constant 0 : i32
    %c0_i32_0 = arith.constant 0 : i32
    %c0_i32_1 = arith.constant 0 : i32
    return %c0_i32, %c0_i32_0 : i32, i32
  }
  func.func @transform_5(%arg0: i32) -> (i32, i32) {
    %c0_i32 = arith.constant 0 : i32
    %c0_i32_0 = arith.constant 0 : i32
    %c0_i32_1 = arith.constant 0 : i32
    return %c0_i32, %c0_i32_0 : i32, i32
  }
  func.func @transform_6(%arg0: i32) -> (i32, i32) {
    %c0_i32 = arith.constant 0 : i32
    %c0_i32_0 = arith.constant 0 : i32
    %c0_i32_1 = arith.constant 0 : i32
    return %c0_i32, %c0_i32_0 : i32, i32
  }
  func.func @transform_7(%arg0: i32) -> (i32, i32) {
    %c0_i32 = arith.constant 0 : i32
    %c0_i32_0 = arith.constant 0 : i32
    return %arg0, %c0_i32 : i32, i32
  }
}

</mosaic_0001>

<bundles_post_ra>
// kernel: tpu_custom_call.1
= control target key start
LH: loop header
LB: loop body
LE: loop exit
PB: predicated region body
PF: predicated region fallthrough
CT: control target
= control target key end

     0   :  { %12 = vsyncpa [#allocation3], 0  ;;  %s2090_s0 = inlined_call_operand.vmem [shape: bf16[512,32], index: 0, kind: input, shape index: {}]   ;;  %s2091_s1 = inlined_call_operand.vmem [shape: bf16[32,128], index: 1, kind: input, shape index: {}]   ;;  %s2092_s2 = inlined_call_operand.vmem [shape: f32[1,128], index: 2, kind: input, shape index: {}]   ;;  %s2093_s3 = inlined_call_operand.vmem [shape: bf16[128,128], index: 3, kind: input, shape index: {}]   ;;  %s2094_s4 = inlined_call_operand.vmem [shape: f32[1,128], index: 4, kind: input, shape index: {}]   ;;  %s2095_s5 = inlined_call_operand.vmem [shape: bf16[128,128], index: 5, kind: input, shape index: {}]   ;;  %s2096_s6 = inlined_call_operand.vmem [shape: f32[1,128], index: 6, kind: input, shape index: {}]   ;;  %s2097_s7 = inlined_call_operand.hbm [shape: f32[512,128], index: 7, kind: output, shape index: {}]  }
   0x1   :  { %14 = vsyncpa [#allocation3 + $0x1], 0  ;;  %s1744_s24 = smov 0   ;;  %s1746_s25 = smov 0  }
   0x2   :  { %s1748_s26 = smov 0   ;;  %s1750_s27 = smov 0  }
   0x3 LB: > { %s1765_s28 = sadd.s32 4294967295, %s1699_s27   ;;  %s1294_s29 = sadd.s32 4294967294, %s1699_s27   ;;  %s1699_s27 = sphi %s1750_s27, %s2103_s27   ;;  %s1695_s26 = sphi %s1748_s26, %s2102_s26   ;;  %s1691_s25 = sphi %s1746_s25, %s2101_s25   ;;  %s1687_s24 = sphi %s1744_s24, %s2100_s24  }
   0x4   : > { %s1769_s30 = sadd.s32 1, %s1699_s27   ;;  %s179_s8 = sadd.s32 1, %s1695_s26 }
   0x5   : > { %s176_s9 = ssub.s32 %s1699_s27, %s1769_s30  ;;  %p189_p0 = scmp.ne.s32.totalorder %s1695_s26, %s1691_s25 }
   0x6   : > { %p177_p1 = scmp.eq.s32.totalorder %s176_s9, 0  ;;  %p190_p2 = scmp.eq.s32.totalorder %s1765_s28, 1 }
   0x7   : > { %p195_p3 = scmp.ne.s32.totalorder %s1691_s25, %s1687_s24  ;;  %p196_p4 = scmp.eq.s32.totalorder %s1294_s29, 1 }
   0x8   : > { %s1780_s10 = scalar_select %p177_p1, %s1695_s26, %s179_s8  }
   0x9   : > { %p1782_p5 = por %p190_p2, %p189_p0  ;;  %p1786_p6 = por %p196_p4, %p195_p3 }
   0xa   : > { %p1297_p7 = scmp.ge.s32.totalorder %s1699_s27, 1  ;;  %p241_p8 = scmp.lt.s32.totalorder %s1699_s27, 3 }
   0xc   : > { %p242_p9 = pnand %p1297_p7, %p241_p8 }
   0xd   : > { %v1603_v0 = vld [vmem:[%s2091_s1] sm:$0xff] (!%p242_p9)   ;;  %s1299_s15 = sshll.u32 (!%p242_p9), %s1765_s28, 5  ;;  %v1604_v1 = vld [vmem:[%s2091_s1 + $0x8] sm:$0xff] (!%p242_p9)   ;;  %vm416_vm0 = vcmask (!%p242_p9), 261120   ;;  %v1623_v12 = vld [vmem:[%s2093_s3 + $0x10] sm:$0xff] (!%p242_p9)   ;;  %s270_s16 = sand.u32 (!%p242_p9), 1, %s1691_s25  }
   0xe   : > { %245 = sbr.rel (%p242_p9) target bundleno = 758 (0x2f6), region = 48  ;;  %p274_p10 = scmp.lt.s32.totalorder (!%p242_p9), %s1299_s15, 63  ;;  %1426 = vmatprep.subr.bf16.mxu0 (!%p242_p9), %v1603_v0  ;;  %1558 = vmatprep.subr.bf16.mxu1 (!%p242_p9), %v1603_v0  ;;  %v1621_v2 = vld [vmem:[%s2093_s3] sm:$0xff] (!%p242_p9)   ;;  %v1622_v9 = vld [vmem:[%s2093_s3 + $0x8] sm:$0xff] (!%p242_p9)   ;;  %v1624_v17 = vld [vmem:[%s2093_s3 + $0x18] sm:$0xff] (!%p242_p9)  }
   0xf   : > { %1427 = vmatpush3.bf16.msra.mxu0 (!%p242_p9), %v1603_v0  ;;  %1560 = vmatpush3.bf16.msra.mxu1 (!%p242_p9), %v1603_v0  ;;  %v1625_v18 = vld [vmem:[%s2093_s3 + $0x20] sm:$0xff] (!%p242_p9)   ;;  %v1626_v22 = vld [vmem:[%s2093_s3 + $0x28] sm:$0xff] (!%p242_p9)   ;;  %v1627_v24 = vld [vmem:[%s2093_s3 + $0x30] sm:$0xff] (!%p242_p9)   ;;  %s1298_s17 = sshll.u32 (!%p242_p9), %s270_s16, 8  ;;  %s1359_s21 = sshll.u32 (!%p242_p9), %s1765_s28, 12 }
  0x10   : > { %1428 = vmatprep.subr.bf16.mxu0 (!%p242_p9), %v1604_v1  ;;  %1559 = vmatprep.subr.bf16.mxu1 (!%p242_p9), %v1604_v1  ;;  %v1628_v25 = vld [vmem:[%s2093_s3 + $0x38] sm:$0xff] (!%p242_p9)   ;;  %v1629_v26 = vld [vmem:[%s2095_s5] sm:$0xff] (!%p242_p9)   ;;  %v1630_v27 = vld [vmem:[%s2095_s5 + $0x8] sm:$0xff] (!%p242_p9)   ;;  %s2039_s9 = scalar_lea.hbm (!%p242_p9), %s2097_s7, %s1359_s21  ;;  %s2049_s28 = scalar_lea.sflag (!%p242_p9), [#allocation3], %s270_s16 }
  0x11   : > { %v1631_v28 = vld [vmem:[%s2095_s5 + $0x10] sm:$0xff] (!%p242_p9)   ;;  %v1632_v29 = vld [vmem:[%s2095_s5 + $0x18] sm:$0xff] (!%p242_p9)   ;;  %v1633_v30 = vld [vmem:[%s2095_s5 + $0x20] sm:$0xff] (!%p242_p9)   ;;  %s1701_s13 = smov (!%p242_p9), [#allocation2]  }
  0x12   : > { %v1634_v31 = vld [vmem:[%s2095_s5 + $0x28] sm:$0xff] (!%p242_p9)   ;;  %v1881_v32 = vld [vmem:[%s2092_s2] ss:$0 sm:$0xff] (!%p242_p9)  ;;  %s1641_s14 = sshll.u32 (!%p242_p9), %s1701_s13, 4  ;;  %s1642_s14 = int_to_ptr.vmem [resolvable:$false] %s1641_s14 }
  0x13   : > { %1429 = vmatpush3.bf16.msra.mxu0 (!%p242_p9), %v1604_v1  ;;  %1561 = vmatpush3.bf16.msra.mxu1 (!%p242_p9), %v1604_v1 }
  0x14   : > { %1462 = vmatprep.subr.bf16.mxu1 (!%p242_p9), %v1621_v2  ;;  %1510 = vmatprep.subr.bf16.mxu0 (!%p242_p9), %v1629_v26 }
  0x15   : > { %s2105_s15 = smov (!%p274_p10, %s1299_s15), 63 }
  0x16   : > { %s1300_s20 = sshll.u32 %s2105_s15, 2  ;;  %s1643_s15 = scalar_lea.vmem %s1642_s14, 8192 }
  0x17   : > { %s1805_s23 = scalar_lea.vmem %s2090_s0, %s1300_s20  ;;  %s1974_s20 = scalar_lea.vmem [#allocation2], %s1298_s17 }
  0x18   : > { %v1605_v3 = vld [vmem:[%s1805_s23] sm:$0xff]   ;;  %v1606_v4 = vld [vmem:[%s1805_s23 + $0x8] sm:$0xff]   ;;  %v1607_v5 = vld [vmem:[%s1805_s23 + $0x10] sm:$0xff]   ;;  %s1232_s22 = sshll.u32 %s1974_s20, 4  ;;  %s2041_s22 = int_to_ptr.vmem [resolvable:$true] %s1232_s22 }
  0x19   : > { %1430 = vmatprep.mubr.msk.bf16.mxu0 %vm416_vm0, %v1605_v3  ;;  %v1608_v6 = vld [vmem:[%s1805_s23 + $0x18] sm:$0xff]   ;;  %v1609_v7 = vld [vmem:[%s1805_s23 + $0x20] sm:$0xff]   ;;  %v1614_v10 = vld [vmem:[%s1805_s23 + $0x48] sm:$0xff]   ;;  %p1644_p0 = scmp.lt.s32.totalorder %s2041_s22, %s1642_s14 }
  0x1a   : > { %1431 = vmatmul.mubr.msk.bf16.vlgmr.msra.gmra.mrb[0].mxu0 %vm416_vm0, %v1606_v4  ;;  %v1613_v8 = vld [vmem:[%s1805_s23 + $0x40] sm:$0xff]   ;;  %v1615_v11 = vld [vmem:[%s1805_s23 + $0x50] sm:$0xff]   ;;  %v1610_v13 = vld [vmem:[%s1805_s23 + $0x28] sm:$0xff]  }
  0x1b   : > { %1434 = vmatprep.mubr.msk.bf16.mxu0 %vm416_vm0, %v1607_v5  ;;  %1446 = vmatprep.mubr.msk.bf16.mxu1 %vm416_vm0, %v1613_v8  ;;  %v1611_v14 = vld [vmem:[%s1805_s23 + $0x30] sm:$0xff]   ;;  %v1616_v15 = vld [vmem:[%s1805_s23 + $0x58] sm:$0xff]   ;;  %v1617_v16 = vld [vmem:[%s1805_s23 + $0x60] sm:$0xff]  }
  0x1c   : > { %1447 = vmatmul.mubr.msk.bf16.vlgmr.msra.gmra.mrb[0].mxu1 %vm416_vm0, %v1614_v10  ;;  %v1612_v19 = vld [vmem:[%s1805_s23 + $0x38] sm:$0xff]   ;;  %v1618_v20 = vld [vmem:[%s1805_s23 + $0x68] sm:$0xff]   ;;  %v1619_v21 = vld [vmem:[%s1805_s23 + $0x70] sm:$0xff]   ;;  %1511 = vmatpush3.bf16.msra.mxu0 %v1629_v26 }
  0x1d   : > { %1450 = vmatprep.mubr.msk.bf16.mxu1 %vm416_vm0, %v1615_v11  ;;  %1463 = vmatpush3.bf16.msra.mxu1 %v1621_v2  ;;  %v1620_v23 = vld [vmem:[%s1805_s23 + $0x78] sm:$0xff]   ;;  %s1637_s23 = scalar_lea.vmem %s2041_s22, 4096 }
  0x1e   : > { %1464 = vmatprep.subr.bf16.mxu1 %v1622_v9  ;;  %1512 = vmatprep.subr.bf16.mxu0 %v1630_v27  ;;  %p1638_p11 = scmp.ne.s32.totalorder %s2041_s22, %s1637_s23  ;;  %p1645_p1 = scmp.lt.s32.totalorder %s1643_s15, %s1637_s23 }
  0x20   : > { %1513 = vmatpush3.bf16.msra.mxu0 %v1630_v27  ;;  %p1639_p12 = pnand %p1638_p11, %p1782_p5  ;;  %p1646_p2 = por %p1645_p1, %p1644_p0 }
  0x21   : > { %1465 = vmatpush3.bf16.msra.mxu1 %v1622_v9  ;;  %1514 = vmatprep.subr.bf16.mxu0 %v1631_v28 }
  0x22   : > { %1435 = vmatmul.mubr.msk.bf16.gmra.mrb[4].mxu0 %vm416_vm0, %v1608_v6  ;;  %1466 = vmatprep.subr.bf16.mxu1 %v1623_v12  ;;  %p1640_p13 = pneg %p1639_p12 }
  0x23   : > { %1438 = vmatprep.mubr.msk.bf16.mxu0 %vm416_vm0, %v1609_v7 }
  0x24   : > { %1451 = vmatmul.mubr.msk.bf16.gmra.mrb[4].mxu1 %vm416_vm0, %v1616_v15  ;;  %1515 = vmatpush3.bf16.msra.mxu0 %v1631_v28  ;;  %p1647_p3 = pnand %p1646_p2, %p1640_p13 }
  0x25   : > { %1454 = vmatprep.mubr.msk.bf16.mxu1 %vm416_vm0, %v1617_v16  ;;  %1467 = vmatpush3.bf16.msra.mxu1 %v1623_v12 }
  0x26   : > { %1468 = vmatprep.subr.bf16.mxu1 %v1624_v17  ;;  %1516 = vmatprep.subr.bf16.mxu0 %v1632_v29 }
  0x28   : > { %1517 = vmatpush3.bf16.msra.mxu0 %v1632_v29 }
  0x29   : > { %1469 = vmatpush3.bf16.msra.mxu1 %v1624_v17  ;;  %1518 = vmatprep.subr.bf16.mxu0 %v1633_v30 }
  0x2a   : > { %1439 = vmatmul.mubr.msk.bf16.gmra.mrb[8].mxu0 %vm416_vm0, %v1610_v13  ;;  %1470 = vmatprep.subr.bf16.mxu1 %v1625_v18 }
  0x2b   : > { %1442 = vmatprep.mubr.msk.bf16.mxu0 %vm416_vm0, %v1611_v14 }
  0x2c   : > { %1455 = vmatmul.mubr.msk.bf16.gmra.mrb[8].mxu1 %vm416_vm0, %v1618_v20  ;;  %1519 = vmatpush3.bf16.msra.mxu0 %v1633_v30 }
  0x2d   : > { %1458 = vmatprep.mubr.msk.bf16.mxu1 %vm416_vm0, %v1619_v21  ;;  %1471 = vmatpush3.bf16.msra.mxu1 %v1625_v18 }
  0x2e   : > { %1472 = vmatprep.subr.bf16.mxu1 %v1626_v22  ;;  %1520 = vmatprep.subr.bf16.mxu0 %v1634_v31 }
  0x30   : > { %1521 = vmatpush3.bf16.msra.mxu0 %v1634_v31 }
  0x31   : > { %1473 = vmatpush3.bf16.msra.mxu1 %v1626_v22 }
  0x32   : > { %1443 = vmatmul.mubr.msk.bf16.gmra.mrb[12].mxu0 %vm416_vm0, %v1612_v19  ;;  %1474 = vmatprep.subr.bf16.mxu1 %v1627_v24 }
  0x34   : > { %1459 = vmatmul.mubr.msk.bf16.gmra.mrb[12].mxu1 %vm416_vm0, %v1620_v23 }
  0x35   : > { %1475 = vmatpush3.bf16.msra.mxu1 %v1627_v24 }
  0x36   : > { %1476 = vmatprep.subr.bf16.mxu1 %v1628_v25 }
  0x39   : > { %1477 = vmatpush3.bf16.msra.mxu1 %v1628_v25 }
  0xed   : > { %v1432_v33 = vpop.f32.mrb[0].mxu0 }
  0xee   : > { %v508_v34 = vadd.f32 %v1432_v33, %v1881_v32  ;;  %v499_v35 = vpop.f32.mrb[1].mxu0 }
  0xef   : > { %v500_v36 = vadd.f32 %v1881_v32, %v499_v35  ;;  %v1433_v37 = vpop.f32.mrb[2].mxu0  ;;  %v1448_v48 = vpop.f32.mrb[0].mxu1 }
  0xf0   : > { %v511_v38 = vadd.f32 %v1433_v37, %v1881_v32  ;;  %v502_v39 = vpop.f32.mrb[3].mxu0  ;;  %v628_v41 = vmax.f32 %v508_v34, 0.0  ;;  %v572_v51 = vadd.f32 %v1448_v48, %v1881_v32  ;;  %v563_v52 = vpop.f32.mrb[1].mxu1 }
  0xf1   : > { %v503_v40 = vadd.f32 %v1881_v32, %v502_v39  ;;  %v626_v43 = vmax.f32 %v500_v36, 0.0  ;;  %v564_v55 = vadd.f32 %v1881_v32, %v563_v52  ;;  %v1449_v56 = vpop.f32.mrb[2].mxu1 }
  0xf2   : > { %v629_v42 = vmax.f32 %v511_v38, 0.0  ;;  %v644_v59 = vmax.f32 %v572_v51, 0.0  ;;  %v575_v60 = vadd.f32 %v1449_v56, %v1881_v32  ;;  %v566_v61 = vpop.f32.mrb[3].mxu1 }
  0xf3   : > { %v627_v44 = vmax.f32 %v503_v40, 0.0  ;;  %v642_v63 = vmax.f32 %v564_v55, 0.0  ;;  %v567_v0 = vadd.f32 %v1881_v32, %v566_v61 }
  0xf4   : > { %v659_v45 = vpack.c.bf16 %v629_v42, %v628_v41  ;;  %v645_v3 = vmax.f32 %v575_v60, 0.0 }
  0xf5   : > { %v658_v46 = vpack.c.bf16 %v627_v44, %v626_v43  ;;  %v1436_v47 = vpop.f32.mrb[4].mxu0  ;;  %v643_v6 = vmax.f32 %v567_v0, 0.0 }
  0xf6   : > { %v524_v49 = vadd.f32 %v1436_v47, %v1881_v32  ;;  %v515_v50 = vpop.f32.mrb[5].mxu0  ;;  %v1895_v8 = vpack.c.bf16 %v645_v3, %v644_v59 }
  0xf7   : > { %v516_v53 = vadd.f32 %v1881_v32, %v515_v50  ;;  %v1437_v54 = vpop.f32.mrb[6].mxu0  ;;  %1478 = vmatprep.mubr.bf16.mxu1 %v658_v46  ;;  %v1897_v11 = vpack.c.bf16 %v643_v6, %v642_v63  ;;  %v1452_v12 = vpop.f32.mrb[4].mxu1 }
  0xf8   : > { %v527_v57 = vadd.f32 %v1437_v54, %v1881_v32  ;;  %v518_v58 = vpop.f32.mrb[7].mxu0  ;;  %1479 = vmatmul.mubr.bf16.vlgmr.msra.gmra.mrb[16].mxu1 %v659_v45  ;;  %v632_v1 = vmax.f32 %v524_v49, 0.0  ;;  %v588_v15 = vadd.f32 %v1452_v12, %v1881_v32  ;;  %v579_v16 = vpop.f32.mrb[5].mxu1 }
  0xf9   : > { %v519_v62 = vadd.f32 %v1881_v32, %v518_v58  ;;  %v630_v4 = vmax.f32 %v516_v53, 0.0  ;;  %v580_v19 = vadd.f32 %v1881_v32, %v579_v16  ;;  %v1453_v20 = vpop.f32.mrb[6].mxu1 }
  0xfa   : > { %v633_v2 = vmax.f32 %v527_v57, 0.0  ;;  %v648_v23 = vmax.f32 %v588_v15, 0.0  ;;  %v591_v24 = vadd.f32 %v1453_v20, %v1881_v32  ;;  %v582_v25 = vpop.f32.mrb[7].mxu1  ;;  %v1635_v20 = vld [vmem:[%s2095_s5 + $0x30] sm:$0xff]  }
  0xfb   : > { %v631_v5 = vmax.f32 %v519_v62, 0.0  ;;  %v646_v27 = vmax.f32 %v580_v19, 0.0  ;;  %v583_v28 = vadd.f32 %v1881_v32, %v582_v25  ;;  %1522 = vmatprep.subr.bf16.mxu0 %v1635_v20 }
  0xfc   : > { %v661_v7 = vpack.c.bf16 %v633_v2, %v632_v1  ;;  %v649_v31 = vmax.f32 %v591_v24, 0.0  ;;  %1523 = vmatpush3.bf16.msra.mxu0 %v1635_v20 }
  0xfd   : > { %v660_v9 = vpack.c.bf16 %v631_v5, %v630_v4  ;;  %v1440_v10 = vpop.f32.mrb[8].mxu0  ;;  %v647_v35 = vmax.f32 %v583_v28, 0.0 }
  0xfe   : > { %v540_v13 = vadd.f32 %v1440_v10, %v1881_v32  ;;  %v531_v14 = vpop.f32.mrb[9].mxu0  ;;  %v669_v37 = vpack.c.bf16 %v649_v31, %v648_v23 }
  0xff   : > { %v532_v17 = vadd.f32 %v1881_v32, %v531_v14  ;;  %v1441_v18 = vpop.f32.mrb[10].mxu0  ;;  %1482 = vmatprep.mubr.bf16.mxu1 %v660_v9  ;;  %v668_v40 = vpack.c.bf16 %v647_v35, %v646_v27  ;;  %v1456_v41 = vpop.f32.mrb[8].mxu1 }
 0x100   : > { %v543_v21 = vadd.f32 %v1441_v18, %v1881_v32  ;;  %v534_v22 = vpop.f32.mrb[11].mxu0  ;;  %1483 = vmatmul.mubr.bf16.gmra.mrb[20].mxu1 %v661_v7  ;;  %v636_v29 = vmax.f32 %v540_v13, 0.0  ;;  %v604_v44 = vadd.f32 %v1456_v41, %v1881_v32  ;;  %v595_v45 = vpop.f32.mrb[9].mxu1 }
 0x101   : > { %v535_v26 = vadd.f32 %v1881_v32, %v534_v22  ;;  %v634_v33 = vmax.f32 %v532_v17, 0.0  ;;  %v596_v48 = vadd.f32 %v1881_v32, %v595_v45  ;;  %v1457_v49 = vpop.f32.mrb[10].mxu1 }
 0x102   : > { %v637_v30 = vmax.f32 %v543_v21, 0.0  ;;  %v652_v52 = vmax.f32 %v604_v44, 0.0  ;;  %v607_v53 = vadd.f32 %v1457_v49, %v1881_v32  ;;  %v598_v54 = vpop.f32.mrb[11].mxu1 }
 0x103   : > { %v635_v34 = vmax.f32 %v535_v26, 0.0  ;;  %v650_v56 = vmax.f32 %v596_v48, 0.0  ;;  %v599_v57 = vadd.f32 %v1881_v32, %v598_v54 }
 0x104   : > { %v663_v36 = vpack.c.bf16 %v637_v30, %v636_v29  ;;  %v653_v60 = vmax.f32 %v607_v53, 0.0 }
 0x105   : > { %v662_v38 = vpack.c.bf16 %v635_v34, %v634_v33  ;;  %v1444_v39 = vpop.f32.mrb[12].mxu0  ;;  %v651_v63 = vmax.f32 %v599_v57, 0.0 }
 0x106   : > { %v556_v42 = vadd.f32 %v1444_v39, %v1881_v32  ;;  %v547_v43 = vpop.f32.mrb[13].mxu0  ;;  %v671_v1 = vpack.c.bf16 %v653_v60, %v652_v52 }
 0x107   : > { %v548_v46 = vadd.f32 %v1881_v32, %v547_v43  ;;  %v1445_v47 = vpop.f32.mrb[14].mxu0  ;;  %1486 = vmatprep.mubr.bf16.mxu1 %v662_v38  ;;  %v670_v3 = vpack.c.bf16 %v651_v63, %v650_v56  ;;  %v1460_v4 = vpop.f32.mrb[12].mxu1 }
 0x108   : > { %v559_v50 = vadd.f32 %v1445_v47, %v1881_v32  ;;  %v550_v51 = vpop.f32.mrb[15].mxu0  ;;  %1487 = vmatmul.mubr.bf16.gmra.mrb[24].mxu1 %v663_v36  ;;  %v640_v58 = vmax.f32 %v556_v42, 0.0  ;;  %v620_v5 = vadd.f32 %v1460_v4, %v1881_v32  ;;  %v611_v6 = vpop.f32.mrb[13].mxu1 }
 0x109   : > { %v551_v55 = vadd.f32 %v1881_v32, %v550_v51  ;;  %v638_v61 = vmax.f32 %v548_v46, 0.0  ;;  %v612_v7 = vadd.f32 %v1881_v32, %v611_v6  ;;  %v1461_v9 = vpop.f32.mrb[14].mxu1 }
 0x10a   : > { %v641_v59 = vmax.f32 %v559_v50, 0.0  ;;  %v656_v10 = vmax.f32 %v620_v5, 0.0  ;;  %v623_v12 = vadd.f32 %v1461_v9, %v1881_v32  ;;  %v614_v13 = vpop.f32.mrb[15].mxu1 }
 0x10b   : > { %v639_v62 = vmax.f32 %v551_v55, 0.0  ;;  %v654_v14 = vmax.f32 %v612_v7, 0.0  ;;  %v615_v15 = vadd.f32 %v1881_v32, %v614_v13  ;;  %v1636_v32 = vld [vmem:[%s2095_s5 + $0x38] sm:$0xff]  }
 0x10c   : > { %v665_v0 = vpack.c.bf16 %v641_v59, %v640_v58  ;;  %v657_v16 = vmax.f32 %v623_v12, 0.0  ;;  %1524 = vmatprep.subr.bf16.mxu0 %v1636_v32 }
 0x10d   : > { %v664_v2 = vpack.c.bf16 %v639_v62, %v638_v61  ;;  %v655_v17 = vmax.f32 %v615_v15, 0.0  ;;  %1525 = vmatpush3.bf16.msra.mxu0 %v1636_v32 }
 0x10e   : > { %v673_v18 = vpack.c.bf16 %v657_v16, %v656_v10 }
 0x10f   : > { %1490 = vmatprep.mubr.bf16.mxu1 %v664_v2  ;;  %v672_v19 = vpack.c.bf16 %v655_v17, %v654_v14 }
 0x110   : > { %1491 = vmatmul.mubr.bf16.gmra.mrb[28].mxu1 %v665_v0 }
 0x111   : > { %1494 = vmatprep.mubr.bf16.mxu1 %v1897_v11 }
 0x118   : > { %1495 = vmatmul.mubr.bf16.gmra.mrb[32].mxu1 %v1895_v8  ;;  %v1930_v8 = vld [vmem:[%s2094_s4] ss:$0 sm:$0xff] }
 0x119   : > { %1498 = vmatprep.mubr.bf16.mxu1 %v668_v40 }
 0x120   : > { %1499 = vmatmul.mubr.bf16.gmra.mrb[36].mxu1 %v669_v37 }
 0x121   : > { %1502 = vmatprep.mubr.bf16.mxu1 %v670_v3 }
 0x128   : > { %1503 = vmatmul.mubr.bf16.gmra.mrb[40].mxu1 %v671_v1 }
 0x129   : > { %1506 = vmatprep.mubr.bf16.mxu1 %v672_v19 }
 0x130   : > { %1507 = vmatmul.mubr.bf16.gmra.mrb[44].mxu1 %v673_v18 }
 0x1cb   : > { %v1480_v11 = vpop.f32.mrb[16].mxu1 }
 0x1cc   : > { %v788_v21 = vadd.f32 %v1480_v11, %v1930_v8  ;;  %v779_v22 = vpop.f32.mrb[17].mxu1 }
 0x1cd   : > { %v780_v23 = vadd.f32 %v1930_v8, %v779_v22  ;;  %v1481_v24 = vpop.f32.mrb[18].mxu1 }
 0x1ce   : > { %v791_v25 = vadd.f32 %v1481_v24, %v1930_v8  ;;  %v782_v26 = vpop.f32.mrb[19].mxu1  ;;  %v908_v28 = vmax.f32 %v788_v21, 0.0 }
 0x1cf   : > { %v783_v27 = vadd.f32 %v1930_v8, %v782_v26  ;;  %v906_v30 = vmax.f32 %v780_v23, 0.0 }
 0x1d0   : > { %v909_v29 = vmax.f32 %v791_v25, 0.0 }
 0x1d1   : > { %v907_v31 = vmax.f32 %v783_v27, 0.0 }
 0x1d2   : > { %v939_v33 = vpack.c.bf16 %v909_v29, %v908_v28 }
 0x1d3   : > { %v938_v34 = vpack.c.bf16 %v907_v31, %v906_v30  ;;  %v1484_v35 = vpop.f32.mrb[20].mxu1 }
 0x1d4   : > { %v804_v36 = vadd.f32 %v1484_v35, %v1930_v8  ;;  %v795_v37 = vpop.f32.mrb[21].mxu1 }
 0x1d5   : > { %v796_v38 = vadd.f32 %v1930_v8, %v795_v37  ;;  %v1485_v39 = vpop.f32.mrb[22].mxu1  ;;  %1526 = vmatprep.mubr.bf16.mxu0 %v938_v34 }
 0x1d6   : > { %v807_v40 = vadd.f32 %v1485_v39, %v1930_v8  ;;  %v798_v41 = vpop.f32.mrb[23].mxu1  ;;  %1527 = vmatmul.mubr.bf16.vlgmr.msra.gmra.mrb[16].mxu0 %v939_v33  ;;  %v912_v43 = vmax.f32 %v804_v36, 0.0 }
 0x1d7   : > { %v799_v42 = vadd.f32 %v1930_v8, %v798_v41  ;;  %v910_v45 = vmax.f32 %v796_v38, 0.0 }
 0x1d8   : > { %v913_v44 = vmax.f32 %v807_v40, 0.0 }
 0x1d9   : > { %v911_v46 = vmax.f32 %v799_v42, 0.0 }
 0x1da   : > { %v941_v47 = vpack.c.bf16 %v913_v44, %v912_v43 }
 0x1db   : > { %v940_v48 = vpack.c.bf16 %v911_v46, %v910_v45  ;;  %v1488_v49 = vpop.f32.mrb[24].mxu1 }
 0x1dc   : > { %v820_v50 = vadd.f32 %v1488_v49, %v1930_v8  ;;  %v811_v51 = vpop.f32.mrb[25].mxu1 }
 0x1dd   : > { %v812_v52 = vadd.f32 %v1930_v8, %v811_v51  ;;  %v1489_v53 = vpop.f32.mrb[26].mxu1  ;;  %1530 = vmatprep.mubr.bf16.mxu0 %v940_v48 }
 0x1de   : > { %v823_v54 = vadd.f32 %v1489_v53, %v1930_v8  ;;  %v814_v55 = vpop.f32.mrb[27].mxu1  ;;  %1531 = vmatmul.mubr.bf16.gmra.mrb[20].mxu0 %v941_v47  ;;  %v916_v57 = vmax.f32 %v820_v50, 0.0 }
 0x1df   : > { %v815_v56 = vadd.f32 %v1930_v8, %v814_v55  ;;  %v914_v59 = vmax.f32 %v812_v52, 0.0 }
 0x1e0   : > { %v917_v58 = vmax.f32 %v823_v54, 0.0 }
 0x1e1   : > { %v915_v60 = vmax.f32 %v815_v56, 0.0 }
 0x1e2   : > { %v943_v61 = vpack.c.bf16 %v917_v58, %v916_v57 }
 0x1e3   : > { %v942_v62 = vpack.c.bf16 %v915_v60, %v914_v59  ;;  %v1492_v63 = vpop.f32.mrb[28].mxu1 }
 0x1e4   : > { %v836_v0 = vadd.f32 %v1492_v63, %v1930_v8  ;;  %v827_v1 = vpop.f32.mrb[29].mxu1 }
 0x1e5   : > { %v828_v2 = vadd.f32 %v1930_v8, %v827_v1  ;;  %v1493_v3 = vpop.f32.mrb[30].mxu1  ;;  %1534 = vmatprep.mubr.bf16.mxu0 %v942_v62 }
 0x1e6   : > { %v839_v4 = vadd.f32 %v1493_v3, %v1930_v8  ;;  %v830_v5 = vpop.f32.mrb[31].mxu1  ;;  %1535 = vmatmul.mubr.bf16.gmra.mrb[24].mxu0 %v943_v61  ;;  %v920_v7 = vmax.f32 %v836_v0, 0.0 }
 0x1e7   : > { %v831_v6 = vadd.f32 %v1930_v8, %v830_v5  ;;  %v918_v10 = vmax.f32 %v828_v2, 0.0 }
 0x1e8   : > { %v921_v9 = vmax.f32 %v839_v4, 0.0 }
 0x1e9   : > { %v919_v12 = vmax.f32 %v831_v6, 0.0  ;;  %v1970_v6 = vld [vmem:[%s2096_s6] ss:$0 sm:$0xff] }
 0x1ea   : > { %v945_v13 = vpack.c.bf16 %v921_v9, %v920_v7 }
 0x1eb   : > { %v944_v14 = vpack.c.bf16 %v919_v12, %v918_v10  ;;  %v1496_v15 = vpop.f32.mrb[32].mxu1 }
 0x1ec   : > { %v852_v16 = vadd.f32 %v1496_v15, %v1930_v8  ;;  %v843_v17 = vpop.f32.mrb[33].mxu1 }
 0x1ed   : > { %v844_v18 = vadd.f32 %v1930_v8, %v843_v17  ;;  %v1497_v19 = vpop.f32.mrb[34].mxu1  ;;  %1538 = vmatprep.mubr.bf16.mxu0 %v944_v14 }
 0x1ee   : > { %v855_v20 = vadd.f32 %v1497_v19, %v1930_v8  ;;  %v846_v32 = vpop.f32.mrb[35].mxu1  ;;  %1539 = vmatmul.mubr.bf16.gmra.mrb[28].mxu0 %v945_v13  ;;  %v924_v21 = vmax.f32 %v852_v16, 0.0 }
 0x1ef   : > { %v847_v11 = vadd.f32 %v1930_v8, %v846_v32  ;;  %v922_v23 = vmax.f32 %v844_v18, 0.0 }
 0x1f0   : > { %v925_v22 = vmax.f32 %v855_v20, 0.0 }
 0x1f1   : > { %v923_v24 = vmax.f32 %v847_v11, 0.0 }
 0x1f2   : > { %v947_v25 = vpack.c.bf16 %v925_v22, %v924_v21 }
 0x1f3   : > { %v946_v26 = vpack.c.bf16 %v923_v24, %v922_v23  ;;  %v1500_v27 = vpop.f32.mrb[36].mxu1 }
 0x1f4   : > { %v868_v28 = vadd.f32 %v1500_v27, %v1930_v8  ;;  %v859_v29 = vpop.f32.mrb[37].mxu1 }
 0x1f5   : > { %v860_v30 = vadd.f32 %v1930_v8, %v859_v29  ;;  %v1501_v31 = vpop.f32.mrb[38].mxu1  ;;  %1542 = vmatprep.mubr.bf16.mxu0 %v946_v26 }
 0x1f6   : > { %v871_v33 = vadd.f32 %v1501_v31, %v1930_v8  ;;  %v862_v34 = vpop.f32.mrb[39].mxu1  ;;  %1543 = vmatmul.mubr.bf16.gmra.mrb[32].mxu0 %v947_v25  ;;  %v928_v36 = vmax.f32 %v868_v28, 0.0 }
 0x1f7   : > { %v863_v35 = vadd.f32 %v1930_v8, %v862_v34  ;;  %v926_v38 = vmax.f32 %v860_v30, 0.0 }
 0x1f8   : > { %v929_v37 = vmax.f32 %v871_v33, 0.0 }
 0x1f9   : > { %v927_v39 = vmax.f32 %v863_v35, 0.0 }
 0x1fa   : > { %v949_v40 = vpack.c.bf16 %v929_v37, %v928_v36 }
 0x1fb   : > { %v948_v41 = vpack.c.bf16 %v927_v39, %v926_v38  ;;  %v1504_v42 = vpop.f32.mrb[40].mxu1 }
 0x1fc   : > { %v884_v43 = vadd.f32 %v1504_v42, %v1930_v8  ;;  %v875_v44 = vpop.f32.mrb[41].mxu1 }
 0x1fd   : > { %v876_v45 = vadd.f32 %v1930_v8, %v875_v44  ;;  %v1505_v46 = vpop.f32.mrb[42].mxu1  ;;  %1546 = vmatprep.mubr.bf16.mxu0 %v948_v41 }
 0x1fe   : > { %v887_v47 = vadd.f32 %v1505_v46, %v1930_v8  ;;  %v878_v48 = vpop.f32.mrb[43].mxu1  ;;  %1547 = vmatmul.mubr.bf16.gmra.mrb[36].mxu0 %v949_v40  ;;  %v932_v50 = vmax.f32 %v884_v43, 0.0 }
 0x1ff   : > { %v879_v49 = vadd.f32 %v1930_v8, %v878_v48  ;;  %v930_v52 = vmax.f32 %v876_v45, 0.0 }
 0x200   : > { %v933_v51 = vmax.f32 %v887_v47, 0.0 }
 0x201   : > { %v931_v53 = vmax.f32 %v879_v49, 0.0 }
 0x202   : > { %v951_v54 = vpack.c.bf16 %v933_v51, %v932_v50 }
 0x203   : > { %v950_v55 = vpack.c.bf16 %v931_v53, %v930_v52  ;;  %v1508_v56 = vpop.f32.mrb[44].mxu1 }
 0x204   : > { %v900_v57 = vadd.f32 %v1508_v56, %v1930_v8  ;;  %v891_v58 = vpop.f32.mrb[45].mxu1 }
 0x205   : > { %v892_v59 = vadd.f32 %v1930_v8, %v891_v58  ;;  %v1509_v60 = vpop.f32.mrb[46].mxu1  ;;  %1550 = vmatprep.mubr.bf16.mxu0 %v950_v55 }
 0x206   : > { %v903_v61 = vadd.f32 %v1509_v60, %v1930_v8  ;;  %v894_v62 = vpop.f32.mrb[47].mxu1  ;;  %1551 = vmatmul.mubr.bf16.gmra.mrb[40].mxu0 %v951_v54  ;;  %v936_v0 = vmax.f32 %v900_v57, 0.0 }
 0x207   : > { %v895_v63 = vadd.f32 %v1930_v8, %v894_v62  ;;  %v934_v2 = vmax.f32 %v892_v59, 0.0 }
 0x208   : > { %v937_v1 = vmax.f32 %v903_v61, 0.0 }
 0x209   : > { %v935_v3 = vmax.f32 %v895_v63, 0.0 }
 0x20a   : > { %v953_v4 = vpack.c.bf16 %v937_v1, %v936_v0 }
 0x20b   : > { %v952_v5 = vpack.c.bf16 %v935_v3, %v934_v2 }
 0x20d   : > { %1554 = vmatprep.mubr.bf16.mxu0 %v952_v5 }
 0x20e   : > { %1555 = vmatmul.mubr.bf16.gmra.mrb[44].mxu0 %v953_v4 }
 0x2a9   : > { %v1528_v7 = vpop.f32.mrb[16].mxu0 }
 0x2aa   : > { %v1068_v9 = vadd.f32 %v1528_v7, %v1970_v6  ;;  %v1059_v8 = vpop.f32.mrb[17].mxu0 }
 0x2ab   : > { %v1060_v10 = vadd.f32 %v1970_v6, %v1059_v8  ;;  %v1529_v12 = vpop.f32.mrb[18].mxu0 }
 0x2ac   : > { %1188 = vst [vmem:[%s1974_s20 + $0x10] sm:$0xff] %v1068_v9  ;;  %v1071_v13 = vadd.f32 %v1529_v12, %v1970_v6  ;;  %v1062_v14 = vpop.f32.mrb[19].mxu0 }
 0x2ad   : > { %1186 = vst [vmem:[%s1974_s20] sm:$0xff] %v1060_v10  ;;  %v1063_v15 = vadd.f32 %v1970_v6, %v1062_v14 }
 0x2ae   : > { %1189 = vst [vmem:[%s1974_s20 + $0x18] sm:$0xff] %v1071_v13 }
 0x2af   : > { %1187 = vst [vmem:[%s1974_s20 + $0x8] sm:$0xff] %v1063_v15 }
 0x2b1   : > { %v1532_v16 = vpop.f32.mrb[20].mxu0 }
 0x2b2   : > { %v1084_v17 = vadd.f32 %v1532_v16, %v1970_v6  ;;  %v1075_v18 = vpop.f32.mrb[21].mxu0 }
 0x2b3   : > { %v1076_v19 = vadd.f32 %v1970_v6, %v1075_v18  ;;  %v1533_v20 = vpop.f32.mrb[22].mxu0 }
 0x2b4   : > { %1192 = vst [vmem:[%s1974_s20 + $0x30] sm:$0xff] %v1084_v17  ;;  %v1087_v32 = vadd.f32 %v1533_v20, %v1970_v6  ;;  %v1078_v11 = vpop.f32.mrb[23].mxu0 }
 0x2b5   : > { %1190 = vst [vmem:[%s1974_s20 + $0x20] sm:$0xff] %v1076_v19  ;;  %v1079_v21 = vadd.f32 %v1970_v6, %v1078_v11 }
 0x2b6   : > { %1193 = vst [vmem:[%s1974_s20 + $0x38] sm:$0xff] %v1087_v32 }
 0x2b7   : > { %1191 = vst [vmem:[%s1974_s20 + $0x28] sm:$0xff] %v1079_v21 }
 0x2b9   : > { %v1536_v22 = vpop.f32.mrb[24].mxu0 }
 0x2ba   : > { %v1100_v23 = vadd.f32 %v1536_v22, %v1970_v6  ;;  %v1091_v24 = vpop.f32.mrb[25].mxu0 }
 0x2bb   : > { %v1092_v25 = vadd.f32 %v1970_v6, %v1091_v24  ;;  %v1537_v26 = vpop.f32.mrb[26].mxu0 }
 0x2bc   : > { %1196 = vst [vmem:[%s1974_s20 + $0x50] sm:$0xff] %v1100_v23  ;;  %v1103_v27 = vadd.f32 %v1537_v26, %v1970_v6  ;;  %v1094_v28 = vpop.f32.mrb[27].mxu0 }
 0x2bd   : > { %1194 = vst [vmem:[%s1974_s20 + $0x40] sm:$0xff] %v1092_v25  ;;  %v1095_v29 = vadd.f32 %v1970_v6, %v1094_v28 }
 0x2be   : > { %1197 = vst [vmem:[%s1974_s20 + $0x58] sm:$0xff] %v1103_v27 }
 0x2bf   : > { %1195 = vst [vmem:[%s1974_s20 + $0x48] sm:$0xff] %v1095_v29 }
 0x2c1   : > { %v1540_v30 = vpop.f32.mrb[28].mxu0 }
 0x2c2   : > { %v1116_v31 = vadd.f32 %v1540_v30, %v1970_v6  ;;  %v1107_v33 = vpop.f32.mrb[29].mxu0 }
 0x2c3   : > { %v1108_v34 = vadd.f32 %v1970_v6, %v1107_v33  ;;  %v1541_v35 = vpop.f32.mrb[30].mxu0 }
 0x2c4   : > { %1200 = vst [vmem:[%s1974_s20 + $0x70] sm:$0xff] %v1116_v31  ;;  %v1119_v36 = vadd.f32 %v1541_v35, %v1970_v6  ;;  %v1110_v37 = vpop.f32.mrb[31].mxu0 }
 0x2c5   : > { %1198 = vst [vmem:[%s1974_s20 + $0x60] sm:$0xff] %v1108_v34  ;;  %v1111_v38 = vadd.f32 %v1970_v6, %v1110_v37 }
 0x2c6   : > { %1201 = vst [vmem:[%s1974_s20 + $0x78] sm:$0xff] %v1119_v36 }
 0x2c7   : > { %1199 = vst [vmem:[%s1974_s20 + $0x68] sm:$0xff] %v1111_v38 }
 0x2c9   : > { %v1544_v39 = vpop.f32.mrb[32].mxu0 }
 0x2ca   : > { %v1132_v40 = vadd.f32 %v1544_v39, %v1970_v6  ;;  %v1123_v41 = vpop.f32.mrb[33].mxu0 }
 0x2cb   : > { %v1124_v42 = vadd.f32 %v1970_v6, %v1123_v41  ;;  %v1545_v43 = vpop.f32.mrb[34].mxu0 }
 0x2cc   : > { %1204 = vst [vmem:[%s1974_s20 + $0x90] sm:$0xff] %v1132_v40  ;;  %v1135_v44 = vadd.f32 %v1545_v43, %v1970_v6  ;;  %v1126_v45 = vpop.f32.mrb[35].mxu0 }
 0x2cd   : > { %1202 = vst [vmem:[%s1974_s20 + $0x80] sm:$0xff] %v1124_v42  ;;  %v1127_v46 = vadd.f32 %v1970_v6, %v1126_v45 }
 0x2ce   : > { %1205 = vst [vmem:[%s1974_s20 + $0x98] sm:$0xff] %v1135_v44 }
 0x2cf   : > { %1203 = vst [vmem:[%s1974_s20 + $0x88] sm:$0xff] %v1127_v46 }
 0x2d1   : > { %v1548_v47 = vpop.f32.mrb[36].mxu0 }
 0x2d2   : > { %v1148_v48 = vadd.f32 %v1548_v47, %v1970_v6  ;;  %v1139_v49 = vpop.f32.mrb[37].mxu0 }
 0x2d3   : > { %v1140_v50 = vadd.f32 %v1970_v6, %v1139_v49  ;;  %v1549_v51 = vpop.f32.mrb[38].mxu0 }
 0x2d4   : > { %1208 = vst [vmem:[%s1974_s20 + $0xb0] sm:$0xff] %v1148_v48  ;;  %v1151_v52 = vadd.f32 %v1549_v51, %v1970_v6  ;;  %v1142_v53 = vpop.f32.mrb[39].mxu0 }
 0x2d5   : > { %1206 = vst [vmem:[%s1974_s20 + $0xa0] sm:$0xff] %v1140_v50  ;;  %v1143_v54 = vadd.f32 %v1970_v6, %v1142_v53 }
 0x2d6   : > { %1209 = vst [vmem:[%s1974_s20 + $0xb8] sm:$0xff] %v1151_v52 }
 0x2d7   : > { %1207 = vst [vmem:[%s1974_s20 + $0xa8] sm:$0xff] %v1143_v54 }
 0x2d9   : > { %v1552_v55 = vpop.f32.mrb[40].mxu0 }
 0x2da   : > { %v1164_v56 = vadd.f32 %v1552_v55, %v1970_v6  ;;  %v1155_v57 = vpop.f32.mrb[41].mxu0 }
 0x2db   : > { %v1156_v58 = vadd.f32 %v1970_v6, %v1155_v57  ;;  %v1553_v59 = vpop.f32.mrb[42].mxu0 }
 0x2dc   : > { %1212 = vst [vmem:[%s1974_s20 + $0xd0] sm:$0xff] %v1164_v56  ;;  %v1167_v60 = vadd.f32 %v1553_v59, %v1970_v6  ;;  %v1158_v61 = vpop.f32.mrb[43].mxu0 }
 0x2dd   : > { %1210 = vst [vmem:[%s1974_s20 + $0xc0] sm:$0xff] %v1156_v58  ;;  %v1159_v62 = vadd.f32 %v1970_v6, %v1158_v61 }
 0x2de   : > { %1213 = vst [vmem:[%s1974_s20 + $0xd8] sm:$0xff] %v1167_v60 }
 0x2df   : > { %1211 = vst [vmem:[%s1974_s20 + $0xc8] sm:$0xff] %v1159_v62 }
 0x2e1   : > { %v1556_v63 = vpop.f32.mrb[44].mxu0 }
 0x2e2   : > { %v1180_v0 = vadd.f32 %v1556_v63, %v1970_v6  ;;  %v1171_v1 = vpop.f32.mrb[45].mxu0 }
 0x2e3   : > { %v1172_v2 = vadd.f32 %v1970_v6, %v1171_v1  ;;  %v1557_v3 = vpop.f32.mrb[46].mxu0 }
 0x2e4   : > { %1216 = vst [vmem:[%s1974_s20 + $0xf0] sm:$0xff] %v1180_v0  ;;  %v1183_v4 = vadd.f32 %v1557_v3, %v1970_v6  ;;  %v1174_v5 = vpop.f32.mrb[47].mxu0 }
 0x2e5   : > { %1214 = vst [vmem:[%s1974_s20 + $0xe0] sm:$0xff] %v1172_v2  ;;  %v1175_v7 = vadd.f32 %v1970_v6, %v1174_v5 }
 0x2e6   : > { %1217 = vst [vmem:[%s1974_s20 + $0xf8] sm:$0xff] %v1183_v4 }
 0x2e7   : > { %1215 = vst [vmem:[%s1974_s20 + $0xe8] sm:$0xff] %v1175_v7 }
 0x2e8   : > { %1650 = shalt.err (!%p1647_p3)
}
 0x2e9   : > { %s1651_s16 = scalar_lea.hbm %s2039_s9, 4096  ;;  %s1655_s19 = scalar_lea.hbm %s2097_s7, 8192 }
 0x2ea   : > { %p1652_p4 = scmp.ne.s32.totalorder %s2039_s9, %s1651_s16  ;;  %p1656_p9 = scmp.lt.u32.totalorder %s2039_s9, %s2097_s7 }
 0x2eb   : > { %p1657_p10 = scmp.lt.u32.totalorder %s1655_s19, %s1651_s16  ;;  %p1659_p12 = scmp.lt.u32.totalorder %s1651_s16, %s2039_s9 }
 0x2ec   : > { %p1653_p7 = pnand %p1652_p4, %p1782_p5 }
 0x2ed   : > { %p1658_p11 = por %p1657_p10, %p1656_p9 }
 0x2ee   : > { %p1654_p8 = pneg %p1653_p7 }
 0x2ef   : > { %p1660_p13 = por %p1659_p12, %p1658_p11 }
 0x2f1   : > { %p1661_p0 = pnand %p1660_p13, %p1654_p8 }
 0x2f3   : > { %1664 = shalt.err (!%p1661_p0)
}
 0x2f4   : > { %s1702_s29 = smov 128   ;;  %s1703_s8 = smov 8  }
 0x2f5   : > { %1562 = dma.vmem_to_hbm [thread:$0]  (%p1782_p5), %s2041_s22, 4096, %s2039_s9, %s2049_s28, %s1702_s29, %s1702_s29, %s1703_s8  }
 0x2f6 PF: > { %p1568_p1 = scmp.ge.s32.totalorder %s1699_s27, 2  ;;  %s1247_s23 = sand.u32 1, %s1687_s24  }
 0x2f7   : > { %s1248_s13 = scalar_lea.sflag [#allocation3], %s1247_s23 }
 0x2f8   : > { %p1565_p2 = pnand %p1568_p1, %p1786_p6 }
 0x2fa   : > { %1682 = dma.done.wait (!%p1565_p2), %s1248_s13, 4096  }
 0x2fb   : > { %1684 = vsyncadd (!%p1565_p2), %s1248_s13, 4294963200  ;;  %p17_p3 = scmp.ge.s32.totalorder %s1769_s30, 4   ;;  %s2100_s24 = smov %s1691_s25 }
 0x2fc   : > { %s2101_s25 = smov %s1695_s26  ;;  %s2102_s26 = smov %s1780_s10 }
 0x2fd   : > { %s2103_s27 = smov %s1769_s30  ;;  %19 = sbr.rel (!%p17_p3) target bundleno = 3 (0x3), region = 83 }
 0x304   :  { %1253 = vsyncpa [#allocation3], 1 }
 0x305   :  { %1255 = vsyncpa [#allocation3 + $0x1], 1 }

</bundles_post_ra>
